<compile_context>
chip_gen: v7x
topology: tpu7x:2x2x1
jax: 0.10.0
libtpu: 0.0.40
codegen_flags: <defaults>
</compile_context>

<pallas_src>
import jax
import jax.numpy as jnp
from jax.experimental import pallas as pl
from jax.experimental.pallas import tpu as pltpu

IN_FEATS = 48 * 4 * 4   # 768
HID = 100
OUT = 10
HID_PAD = 128           # lane-dense hidden dim
OUT_PAD = 128           # lane-dense output slab (wrapper optionally slices back to OUT)
NEG_INF = -1e30         # bias fill for padded classes -> exp() == 0 in the softmax sum


def _round_up(n, m):
    return -(-n // m) * m


def mlp_kernel(x_ref, w1_ref, b1_ref, w2_ref, b2_ref, w3_ref, b3_ref, o_ref):
    # Cast to bf16 inside the kernel (no separate wrapper-side cast pass over HBM).
    x = x_ref[...].astype(jnp.bfloat16)
    # fc1 + relu  (bf16 MXU inputs, f32 accumulate + f32 elementwise)
    h1 = jnp.dot(x, w1_ref[...], preferred_element_type=jnp.float32) + b1_ref[...]
    h1 = jnp.maximum(h1, 0.0)
    # fc2 + relu
    h2 = jnp.dot(h1.astype(jnp.bfloat16), w2_ref[...],
                 preferred_element_type=jnp.float32) + b2_ref[...]
    h2 = jnp.maximum(h2, 0.0)
    # fc3 (padded classes get NEG_INF via the padded bias)
    logits = jnp.dot(h2.astype(jnp.bfloat16), w3_ref[...],
                     preferred_element_type=jnp.float32) + b3_ref[...]
    # log-softmax over the class axis (max-shifted; exp/log ride the EUP slot)
    m = jnp.max(logits, axis=1, keepdims=True)
    shifted = logits - m
    lse = jnp.log(jnp.sum(jnp.exp(shifted), axis=1, keepdims=True))
    # bf16 store: halves output HBM traffic on the mem-bound path.
    o_ref[...] = (shifted - lse).astype(o_ref.dtype)


def _vmem_capacity_bytes():
    try:
        return int(pltpu.get_tpu_info().vmem_capacity_bytes)
    except Exception:
        return 64 << 20   # conservative fallback (v7x per-TC VMEM)


def _pick_tiling(B, x_itemsize, tb=None):
    """Pick (TB, B_pad, n_tiles, vmem_limit) from the VMEM budget of this generation."""
    vmem_cap = _vmem_capacity_bytes()
    usable = int(vmem_cap * 0.7)   # headroom for compiler temporaries / internal scratch
    # Per-row VMEM: x double-buffer + bf16 out double-buffer + generous f32 intermediates.
    per_row = 2 * IN_FEATS * x_itemsize + 2 * OUT_PAD * 2 + 6 * HID_PAD * 4
    if tb is None:
        tb_cap = max(256, min(8192, ((usable - (4 << 20)) // per_row) // 8 * 8))
    else:
        tb_cap = max(8, _round_up(int(tb), 8))
    # Balanced tiles minimize padded rows (<= 8 * n_tiles) and wasted work.
    n_tiles = pl.cdiv(B, tb_cap)
    # Ensure >=2 grid steps for large batches so v7x megacore can shard the batch axis
    # (only when each step still keeps >= ~1024 rows of DMA).
    if n_tiles < 2 and B >= 2048:
        n_tiles = 2
    TB = _round_up(pl.cdiv(B, n_tiles), 8)
    B_pad = n_tiles * TB
    vmem_limit = max(16 << 20, min(int(vmem_cap * 0.75), per_row * TB + (8 << 20)))
    return TB, B_pad, n_tiles, int(vmem_limit)


def classifier_forward(x, padded_params, *, tb=None, return_padded=False):
    """x: [B, IN_FEATS] (f32 or bf16); padded_params from prepare_params().

    Returns [B, OUT] bf16 log-probs, or the raw [B_pad, OUT_PAD] slab if return_padded
    (consumer must then mask classes >= OUT and rows >= B; padded classes hold ~NEG_INF).
    """
    w1, b1, w2, b2, w3, b3 = padded_params
    B = x.shape[0]
    assert x.shape[1] == IN_FEATS

    TB, B_pad, n_tiles, vmem_limit = _pick_tiling(B, x.dtype.itemsize, tb)

    if B_pad != B:
        # Only a small remainder pad; zero-copy when B is already a multiple of 8 and
        # tiles balance (producers should supply B % 8 == 0 to skip this entirely).
        x = jnp.pad(x, ((0, B_pad - B), (0, 0)))

    grid = (n_tiles,)

    def const_spec(shape):
        # Constant block index -> Pallas skips re-DMA; weights/biases stay VMEM-resident.
        return pl.BlockSpec(shape, lambda i: (0, 0))

    flops = 2 * B_pad * (IN_FEATS * HID_PAD + HID_PAD * HID_PAD + HID_PAD * OUT_PAD)
    bytes_accessed = (
        x.size * x.dtype.itemsize          # input read (in producer's dtype)
        + B_pad * OUT_PAD * 2              # bf16 output slab
        + (w1.size + w2.size + w3.size) * 2
        + (b1.size + b2.size + b3.size) * 4
    )

    out = pl.pallas_call(
        mlp_kernel,
        out_shape=jax.ShapeDtypeStruct((B_pad, OUT_PAD), jnp.bfloat16),
        grid=grid,
        in_specs=[
            pl.BlockSpec((TB, IN_FEATS), lambda i: (i, 0)),
            const_spec(w1.shape), const_spec(b1.shape),
            const_spec(w2.shape), const_spec(b2.shape),
            const_spec(w3.shape), const_spec(b3.shape),
        ],
        out_specs=pl.BlockSpec((TB, OUT_PAD), lambda i: (i, 0)),
        compiler_params=pltpu.CompilerParams(
            dimension_semantics=("parallel",),
            vmem_limit_bytes=vmem_limit,
        ),
        cost_estimate=pl.CostEstimate(
            flops=flops,
            transcendentals=B_pad * (OUT_PAD + 1),
            bytes_accessed=int(bytes_accessed),
        ),
    )(x, w1, b1, w2, b2, w3, b3)

    if return_padded:
        return out
    # Drop padded rows / padded classes -> exact log-softmax over the 10 real classes.
    return out[:B, :OUT]


def init_params(key):
    """Deterministic init mirroring nn.Linear shapes (weights stored transposed [in, out])."""
    k1, k2, k3, k4, k5, k6 = jax.random.split(key, 6)

    def linear(kw, kb, fan_in, fan_out):
        bound = 1.0 / jnp.sqrt(fan_in)
        w = jax.random.uniform(kw, (fan_in, fan_out), jnp.float32, -bound, bound)
        b = jax.random.uniform(kb, (1, fan_out), jnp.float32, -bound, bound)
        return w, b

    w1, b1 = linear(k1, k2, IN_FEATS, HID)
    w2, b2 = linear(k3, k4, HID, HID)
    w3, b3 = linear(k5, k6, HID, OUT)
    return (w1, b1, w2, b2, w3, b3)


def prepare_params(params):
    """One-time pad to lane-dense 128-wide layouts; weights cast to bf16, biases kept f32."""
    w1, b1, w2, b2, w3, b3 = params
    w1p = jnp.zeros((IN_FEATS, HID_PAD), jnp.float32).at[:, :HID].set(w1)
    b1p = jnp.zeros((1, HID_PAD), jnp.float32).at[:, :HID].set(b1)
    w2p = jnp.zeros((HID_PAD, HID_PAD), jnp.float32).at[:HID, :HID].set(w2)
    b2p = jnp.zeros((1, HID_PAD), jnp.float32).at[:, :HID].set(b2)
    w3p = jnp.zeros((HID_PAD, OUT_PAD), jnp.float32).at[:HID, :OUT].set(w3)
    b3p = jnp.full((1, OUT_PAD), NEG_INF, jnp.float32).at[:, :OUT].set(b3)
    return (w1p.astype(jnp.bfloat16), b1p,
            w2p.astype(jnp.bfloat16), b2p,
            w3p.astype(jnp.bfloat16), b3p)


def _reference_forward(x, params):
    """Pure-JAX f32 reference of the PyTorch forward (for sanity only)."""
    w1, b1, w2, b2, w3, b3 = params
    h1 = jnp.maximum(x @ w1 + b1, 0.0)
    h2 = jnp.maximum(h1 @ w2 + b2, 0.0)
    logits = h2 @ w3 + b3
    return jax.nn.log_softmax(logits, axis=1)


if __name__ == "__main__":
    key = jax.random.PRNGKey(0)
    kx, kp = jax.random.split(key)
    B = 8
    x = jax.random.normal(kx, (B, IN_FEATS), jnp.float32)
    params = init_params(kp)
    padded_params = prepare_params(params)

    out = classifier_forward(x, padded_params)
    jax.block_until_ready(out)

    assert out.shape == (B, OUT)
    out_f32 = out.astype(jnp.float32)
    # log-softmax rows must exp-sum to ~1 over the 10 real classes (bf16 output tolerance)
    row_sums = jnp.sum(jnp.exp(out_f32), axis=1)
    assert jnp.allclose(row_sums, jnp.ones((B,)), atol=2e-2)
    assert bool(jnp.all(jnp.isfinite(out_f32)))
    # loose check against the f32 reference (bf16 matmul inputs + bf16 output -> small drift)
    ref = _reference_forward(x, params)
    assert jnp.allclose(out_f32, ref, atol=0.2), float(jnp.max(jnp.abs(out_f32 - ref)))

    print("KERNEL_OK")
</pallas_src>

<mosaic_0001>
module attributes {stable_mosaic.version = 11 : i64} {
  func.func @mlp_kernel(%arg0: i32, %arg1: memref<8x768xf32, #tpu.memory_space<vmem>>, %arg2: memref<768x128xbf16, #tpu.memory_space<vmem>>, %arg3: memref<1x128xf32, #tpu.memory_space<vmem>>, %arg4: memref<128x128xbf16, #tpu.memory_space<vmem>>, %arg5: memref<1x128xf32, #tpu.memory_space<vmem>>, %arg6: memref<128x128xbf16, #tpu.memory_space<vmem>>, %arg7: memref<1x128xf32, #tpu.memory_space<vmem>>, %arg8: memref<8x128xbf16, #tpu.memory_space<vmem>>) attributes {dimension_semantics = [#tpu.dimension_semantics<parallel>], iteration_bounds = array<i64: 1>, scalar_prefetch = 0 : i64, scratch_operands = 0 : i64, tpu.core_type = #tpu.core_type<tc>, window_params = [{transform_indices = @transform_0, window_bounds = array<i64: 8, 768>}, {pipeline_mode = #tpu.pipeline_mode<synchronous>, transform_indices = @transform_1, window_bounds = array<i64: 768, 128>}, {pipeline_mode = #tpu.pipeline_mode<synchronous>, transform_indices = @transform_2, window_bounds = array<i64: 1, 128>}, {pipeline_mode = #tpu.pipeline_mode<synchronous>, transform_indices = @transform_3, window_bounds = array<i64: 128, 128>}, {pipeline_mode = #tpu.pipeline_mode<synchronous>, transform_indices = @transform_4, window_bounds = array<i64: 1, 128>}, {pipeline_mode = #tpu.pipeline_mode<synchronous>, transform_indices = @transform_5, window_bounds = array<i64: 128, 128>}, {pipeline_mode = #tpu.pipeline_mode<synchronous>, transform_indices = @transform_6, window_bounds = array<i64: 1, 128>}, {transform_indices = @transform_7, window_bounds = array<i64: 8, 128>}]} {
    %c0 = arith.constant 0 : index
    %c0_0 = arith.constant 0 : index
    %0 = vector.load %arg1[%c0, %c0_0] : memref<8x768xf32, #tpu.memory_space<vmem>>, vector<8x768xf32>
    %1 = arith.truncf %0 : vector<8x768xf32> to vector<8x768xbf16>
    %c0_1 = arith.constant 0 : index
    %c0_2 = arith.constant 0 : index
    %2 = vector.load %arg2[%c0_1, %c0_2] : memref<768x128xbf16, #tpu.memory_space<vmem>>, vector<768x128xbf16>
    %cst = arith.constant dense<0.000000e+00> : vector<8x128xf32>
    %3 = tpu.matmul %1, %2, %cst {dimension_numbers = #tpu.dot_dimension_numbers<[1], [0], [0], [1], [0, 0, 1, 1], [], []>} : vector<8x768xbf16>, vector<768x128xbf16>, vector<8x128xf32> -> vector<8x128xf32>
    %c0_3 = arith.constant 0 : index
    %c0_4 = arith.constant 0 : index
    %4 = vector.load %arg3[%c0_3, %c0_4] : memref<1x128xf32, #tpu.memory_space<vmem>>, vector<1x128xf32>
    %5 = vector.broadcast %4 : vector<1x128xf32> to vector<8x128xf32>
    %6 = arith.addf %3, %5 : vector<8x128xf32>
    %cst_5 = arith.constant 0.000000e+00 : f32
    %7 = vector.broadcast %cst_5 : f32 to vector<8x128xf32>
    %8 = arith.maximumf %6, %7 : vector<8x128xf32>
    %9 = arith.truncf %8 : vector<8x128xf32> to vector<8x128xbf16>
    %c0_6 = arith.constant 0 : index
    %c0_7 = arith.constant 0 : index
    %10 = vector.load %arg4[%c0_6, %c0_7] : memref<128x128xbf16, #tpu.memory_space<vmem>>, vector<128x128xbf16>
    %cst_8 = arith.constant dense<0.000000e+00> : vector<8x128xf32>
    %11 = tpu.matmul %9, %10, %cst_8 {dimension_numbers = #tpu.dot_dimension_numbers<[1], [0], [0], [1], [0, 0, 1, 1], [], []>} : vector<8x128xbf16>, vector<128x128xbf16>, vector<8x128xf32> -> vector<8x128xf32>
    %c0_9 = arith.constant 0 : index
    %c0_10 = arith.constant 0 : index
    %12 = vector.load %arg5[%c0_9, %c0_10] : memref<1x128xf32, #tpu.memory_space<vmem>>, vector<1x128xf32>
    %13 = vector.broadcast %12 : vector<1x128xf32> to vector<8x128xf32>
    %14 = arith.addf %11, %13 : vector<8x128xf32>
    %cst_11 = arith.constant 0.000000e+00 : f32
    %15 = vector.broadcast %cst_11 : f32 to vector<8x128xf32>
    %16 = arith.maximumf %14, %15 : vector<8x128xf32>
    %17 = arith.truncf %16 : vector<8x128xf32> to vector<8x128xbf16>
    %c0_12 = arith.constant 0 : index
    %c0_13 = arith.constant 0 : index
    %18 = vector.load %arg6[%c0_12, %c0_13] : memref<128x128xbf16, #tpu.memory_space<vmem>>, vector<128x128xbf16>
    %cst_14 = arith.constant dense<0.000000e+00> : vector<8x128xf32>
    %19 = tpu.matmul %17, %18, %cst_14 {dimension_numbers = #tpu.dot_dimension_numbers<[1], [0], [0], [1], [0, 0, 1, 1], [], []>} : vector<8x128xbf16>, vector<128x128xbf16>, vector<8x128xf32> -> vector<8x128xf32>
    %c0_15 = arith.constant 0 : index
    %c0_16 = arith.constant 0 : index
    %20 = vector.load %arg7[%c0_15, %c0_16] : memref<1x128xf32, #tpu.memory_space<vmem>>, vector<1x128xf32>
    %21 = vector.broadcast %20 : vector<1x128xf32> to vector<8x128xf32>
    %22 = arith.addf %19, %21 : vector<8x128xf32>
    %cst_17 = arith.constant dense<0xFF800000> : vector<8xf32>
    %23 = vector.multi_reduction <maximumf>, %22, %cst_17 [1] : vector<8x128xf32> to vector<8xf32>
    %24 = vector.shape_cast %23 : vector<8xf32> to vector<8x1xf32>
    %25 = vector.broadcast %24 : vector<8x1xf32> to vector<8x128xf32>
    %26 = arith.subf %22, %25 : vector<8x128xf32>
    %27 = math.exp %26 : vector<8x128xf32>
    %cst_18 = arith.constant dense<0.000000e+00> : vector<8xf32>
    %28 = vector.multi_reduction <add>, %27, %cst_18 [1] : vector<8x128xf32> to vector<8xf32>
    %29 = vector.shape_cast %28 : vector<8xf32> to vector<8x1xf32>
    %30 = math.log %29 : vector<8x1xf32>
    %31 = vector.broadcast %30 : vector<8x1xf32> to vector<8x128xf32>
    %32 = arith.subf %26, %31 : vector<8x128xf32>
    %33 = arith.truncf %32 : vector<8x128xf32> to vector<8x128xbf16>
    %c0_19 = arith.constant 0 : index
    %c0_20 = arith.constant 0 : index
    %34 = vector.load %arg8[%c0_19, %c0_20] : memref<8x128xbf16, #tpu.memory_space<vmem>>, vector<8x128xbf16>
    tpu.vector_store %arg8[%c0_19, %c0_20], %33 {strides = array<i32>} : memref<8x128xbf16, #tpu.memory_space<vmem>>, vector<8x128xbf16>,
    return
  }
  func.func @transform_0(%arg0: i32) -> (i32, i32) {
    %c0_i32 = arith.constant 0 : i32
    %c0_i32_0 = arith.constant 0 : i32
    return %arg0, %c0_i32 : i32, i32
  }
  func.func @transform_1(%arg0: i32) -> (i32, i32) {
    %c0_i32 = arith.constant 0 : i32
    %c0_i32_0 = arith.constant 0 : i32
    %c0_i32_1 = arith.constant 0 : i32
    return %c0_i32, %c0_i32_0 : i32, i32
  }
  func.func @transform_2(%arg0: i32) -> (i32, i32) {
    %c0_i32 = arith.constant 0 : i32
    %c0_i32_0 = arith.constant 0 : i32
    %c0_i32_1 = arith.constant 0 : i32
    return %c0_i32, %c0_i32_0 : i32, i32
  }
  func.func @transform_3(%arg0: i32) -> (i32, i32) {
    %c0_i32 = arith.constant 0 : i32
    %c0_i32_0 = arith.constant 0 : i32
    %c0_i32_1 = arith.constant 0 : i32
    return %c0_i32, %c0_i32_0 : i32, i32
  }
  func.func @transform_4(%arg0: i32) -> (i32, i32) {
    %c0_i32 = arith.constant 0 : i32
    %c0_i32_0 = arith.constant 0 : i32
    %c0_i32_1 = arith.constant 0 : i32
    return %c0_i32, %c0_i32_0 : i32, i32
  }
  func.func @transform_5(%arg0: i32) -> (i32, i32) {
    %c0_i32 = arith.constant 0 : i32
    %c0_i32_0 = arith.constant 0 : i32
    %c0_i32_1 = arith.constant 0 : i32
    return %c0_i32, %c0_i32_0 : i32, i32
  }
  func.func @transform_6(%arg0: i32) -> (i32, i32) {
    %c0_i32 = arith.constant 0 : i32
    %c0_i32_0 = arith.constant 0 : i32
    %c0_i32_1 = arith.constant 0 : i32
    return %c0_i32, %c0_i32_0 : i32, i32
  }
  func.func @transform_7(%arg0: i32) -> (i32, i32) {
    %c0_i32 = arith.constant 0 : i32
    %c0_i32_0 = arith.constant 0 : i32
    return %arg0, %c0_i32 : i32, i32
  }
}

</mosaic_0001>

<bundles_post_ra>
// kernel: tpu_custom_call.1
= control target key start
LH: loop header
LB: loop body
LE: loop exit
PB: predicated region body
PF: predicated region fallthrough
CT: control target
= control target key end

     0   :  { %12 = vsyncpa [#allocation3], 0  ;;  %s1390_s0 = inlined_call_operand.hbm [shape: f32[8,768], index: 0, kind: input, shape index: {}]   ;;  %s1391_s1 = inlined_call_operand.hbm [shape: bf16[768,128], index: 1, kind: input, shape index: {}]   ;;  %s1392_s2 = inlined_call_operand.vmem [shape: f32[1,128], index: 2, kind: input, shape index: {}]   ;;  %s1393_s3 = inlined_call_operand.hbm [shape: bf16[128,128], index: 3, kind: input, shape index: {}]   ;;  %s1394_s4 = inlined_call_operand.vmem [shape: f32[1,128], index: 4, kind: input, shape index: {}]   ;;  %s1395_s5 = inlined_call_operand.hbm [shape: bf16[128,128], index: 5, kind: input, shape index: {}]   ;;  %s1396_s6 = inlined_call_operand.vmem [shape: f32[1,128], index: 6, kind: input, shape index: {}]   ;;  %s1397_s7 = inlined_call_operand.hbm [shape: bf16[8,128], index: 7, kind: output, shape index: {}]  }
   0x1   :  { %13 = vsyncpa [#allocation6], 0 }
   0x2   :  { %14 = vsyncpa [#allocation9], 0 }
   0x3   :  { %15 = vsyncpa [#allocation4], 0  ;;  %s1245_s24 = smov [#allocation5]   ;;  %s1127_s28 = scalar_lea.hbm %s1391_s1, 6144 }
   0x4   :  { %s31_s25 = sshll.u32 %s1245_s24, 4  ;;  %p1128_p0 = scmp.ne.s32.totalorder %s1391_s1, %s1127_s28  ;;  %s32_s25 = int_to_ptr.vmem [resolvable:$true] %s31_s25 }
   0x5   :  { %p1131_p1 = scmp.lt.u32.totalorder %s1127_s28, %s1391_s1 }
   0x7   :  { %p1133_p2 = pnand %p1131_p1, %p1128_p0 }
   0x9   :  { %1136 = shalt.err (!%p1133_p2)
}
   0xa   :  { %s1137_s10 = scalar_lea.vmem %s32_s25, 6144  ;;  %p1142_p4 = scmp.lt.s32.totalorder %s32_s25, %s32_s25 }
   0xb   :  { %p1138_p3 = scmp.ne.s32.totalorder %s32_s25, %s1137_s10  ;;  %p1143_p5 = scmp.lt.s32.totalorder %s1137_s10, %s1137_s10 }
   0xd   :  { %p1144_p6 = por %p1143_p5, %p1142_p4 }
   0xf   :  { %p1145_p7 = pnand %p1144_p6, %p1138_p3 }
  0x11   :  { %1148 = shalt.err (!%p1145_p7)
}
  0x12   :  { %s1246_s11 = smov 64   ;;  %s1247_s12 = smov 4  }
  0x13   :  { %37 = dma.hbm_to_vmem [thread:$0]  %s1391_s1, 6144, %s32_s25, [#allocation6], %s1246_s11, %s1246_s11, %s1247_s12  }
  0x14   :  { %s1248_s15 = smov [#allocation2]   ;;  %s1249_s17 = smov [#allocation7]  }
  0x15   :  { %s22_s16 = sshll.u32 %s1248_s15, 4  ;;  %s45_s18 = sshll.u32 %s1249_s17, 4  ;;  %s23_s16 = int_to_ptr.vmem [resolvable:$true] %s22_s16  ;;  %s46_s18 = int_to_ptr.vmem [resolvable:$true] %s45_s18 }
  0x16   :  { %s1149_s21 = scalar_lea.hbm %s1390_s0, 768 }
  0x17   :  { %p1150_p8 = scmp.ne.s32.totalorder %s1390_s0, %s1149_s21  ;;  %p1153_p9 = scmp.lt.u32.totalorder %s1149_s21, %s1390_s0 }
  0x19   :  { %p1155_p10 = pnand %p1153_p9, %p1150_p8 }
  0x1b   :  { %1158 = shalt.err (!%p1155_p10)
}
  0x1c   :  { %s1159_s1 = scalar_lea.vmem %s23_s16, 768  ;;  %p1164_p12 = scmp.lt.s32.totalorder %s23_s16, %s23_s16 }
  0x1d   :  { %p1160_p11 = scmp.ne.s32.totalorder %s23_s16, %s1159_s1  ;;  %p1165_p13 = scmp.lt.s32.totalorder %s1159_s1, %s1159_s1 }
  0x1f   :  { %p1166_p0 = por %p1165_p13, %p1164_p12 }
  0x21   :  { %p1167_p1 = pnand %p1166_p0, %p1160_p11 }
  0x23   :  { %1170 = shalt.err (!%p1167_p1)
}
  0x24   :  { %25 = dma.hbm_to_vmem [thread:$0]  %s1390_s0, 768, %s23_s16, [#allocation3]  }
  0x25   :  { %s1171_s30 = scalar_lea.hbm %s1393_s3, 1024 }
  0x26   :  { %p1172_p2 = scmp.ne.s32.totalorder %s1393_s3, %s1171_s30  ;;  %p1175_p3 = scmp.lt.u32.totalorder %s1171_s30, %s1393_s3 }
  0x28   :  { %p1177_p4 = pnand %p1175_p3, %p1172_p2 }
  0x2a   :  { %1180 = shalt.err (!%p1177_p4)
}
  0x2b   :  { %s1181_s14 = scalar_lea.vmem %s46_s18, 1024  ;;  %p1186_p6 = scmp.lt.s32.totalorder %s46_s18, %s46_s18 }
  0x2c   :  { %p1182_p5 = scmp.ne.s32.totalorder %s46_s18, %s1181_s14  ;;  %p1187_p7 = scmp.lt.s32.totalorder %s1181_s14, %s1181_s14 }
  0x2e   :  { %p1188_p8 = por %p1187_p7, %p1186_p6 }
  0x30   :  { %p1189_p9 = pnand %p1188_p8, %p1182_p5 }
  0x32   :  { %1192 = shalt.err (!%p1189_p9)
}
  0x33   :  { %51 = dma.hbm_to_vmem [thread:$0]  %s1393_s3, 1024, %s46_s18, [#allocation6], %s1246_s11, %s1246_s11, %s1247_s12  }
  0x34   :  { %s1250_s16 = smov [#allocation8]   ;;  %s1193_s21 = scalar_lea.hbm %s1395_s5, 1024 }
  0x35   :  { %s59_s17 = sshll.u32 %s1250_s16, 4  ;;  %p1194_p10 = scmp.ne.s32.totalorder %s1395_s5, %s1193_s21  ;;  %s60_s17 = int_to_ptr.vmem [resolvable:$true] %s59_s17 }
  0x36   :  { %p1197_p11 = scmp.lt.u32.totalorder %s1193_s21, %s1395_s5 }
  0x38   :  { %p1199_p12 = pnand %p1197_p11, %p1194_p10 }
  0x3a   :  { %1202 = shalt.err (!%p1199_p12)
}
  0x3b   :  { %s1203_s1 = scalar_lea.vmem %s60_s17, 1024  ;;  %p1208_p0 = scmp.lt.s32.totalorder %s60_s17, %s60_s17 }
  0x3c   :  { %p1204_p13 = scmp.ne.s32.totalorder %s60_s17, %s1203_s1  ;;  %p1209_p1 = scmp.lt.s32.totalorder %s1203_s1, %s1203_s1 }
  0x3e   :  { %p1210_p2 = por %p1209_p1, %p1208_p0 }
  0x40   :  { %p1211_p3 = pnand %p1210_p2, %p1204_p13 }
  0x42   :  { %1214 = shalt.err (!%p1211_p3)
}
  0x43   :  { %65 = dma.hbm_to_vmem [thread:$0]  %s1395_s5, 1024, %s60_s17, [#allocation9], %s1246_s11, %s1246_s11, %s1247_s12  }
  0x44   :  { %1237 = dma.done.wait [#allocation3], 768  }
  0x45   :  { %1238 = vsyncadd [#allocation3], 4294966528 }
  0x46   :  { %1239 = dma.done.wait [#allocation6], 7168  }
  0x47   :  { %1240 = vsyncadd [#allocation6], 4294960128 }
  0x48   :  { %1241 = dma.done.wait [#allocation9], 1024  }
  0x49   :  { %1242 = vsyncadd [#allocation9], 4294966272  ;;  %v1059_v0 = vld [vmem:[#allocation5 + $0x40] sm:$0xff]   ;;  %v1063_v4 = vld [vmem:[#allocation5 + $0x48] sm:$0xff]   ;;  %v1251_v61 = vmov 0.0   ;;  %vm1252_vm0 = vmmov 0  }
  0x4a   :  { %v1060_v1 = vld [vmem:[#allocation5] sm:$0xff]   ;;  %926 = vmatprep.subr.bf16.mxu0 %v1059_v0  ;;  %v1064_v5 = vld [vmem:[#allocation5 + $0x8] sm:$0xff]   ;;  %v1067_v8 = vld [vmem:[#allocation5 + $0x50] sm:$0xff]  }
  0x4b   :  { %v1061_v2 = vld [vmem:[#allocation5 + $0xc0] sm:$0xff]   ;;  %927 = vmatpush3.bf16.msra.mxu0 %v1060_v1  ;;  %v1065_v6 = vld [vmem:[#allocation5 + $0xc8] sm:$0xff]   ;;  %v1068_v9 = vld [vmem:[#allocation5 + $0x10] sm:$0xff]  }
  0x4c   :  { %v1062_v3 = vld [vmem:[#allocation5 + $0x80] sm:$0xff]   ;;  %948 = vmatprep.subr.bf16.mxu1 %v1061_v2  ;;  %928 = vmatprep.subr.bf16.mxu0 %v1063_v4  ;;  %v1066_v7 = vld [vmem:[#allocation5 + $0x88] sm:$0xff]   ;;  %v1069_v10 = vld [vmem:[#allocation5 + $0xd0] sm:$0xff]  }
  0x4d   :  { %949 = vmatpush3.bf16.msra.mxu1 %v1062_v3  ;;  %v1070_v11 = vld [vmem:[#allocation5 + $0x90] sm:$0xff]   ;;  %v1071_v12 = vld [vmem:[#allocation5 + $0x58] sm:$0xff]   ;;  %v1075_v16 = vld [vmem:[#allocation5 + $0x60] sm:$0xff]  }
  0x4e   :  { %950 = vmatprep.subr.bf16.mxu1 %v1065_v6  ;;  %v1072_v13 = vld [vmem:[#allocation5 + $0x18] sm:$0xff]   ;;  %v1076_v17 = vld [vmem:[#allocation5 + $0x20] sm:$0xff]   ;;  %v1079_v20 = vld [vmem:[#allocation5 + $0x68] sm:$0xff]  }
  0x4f   :  { %929 = vmatpush3.bf16.msra.mxu0 %v1064_v5  ;;  %v1073_v14 = vld [vmem:[#allocation5 + $0xd8] sm:$0xff]   ;;  %v1077_v18 = vld [vmem:[#allocation5 + $0xe0] sm:$0xff]   ;;  %v1080_v21 = vld [vmem:[#allocation5 + $0x28] sm:$0xff]  }
  0x50   :  { %930 = vmatprep.subr.bf16.mxu0 %v1067_v8  ;;  %v1074_v15 = vld [vmem:[#allocation5 + $0x98] sm:$0xff]   ;;  %v1078_v19 = vld [vmem:[#allocation5 + $0xa0] sm:$0xff]   ;;  %v1081_v22 = vld [vmem:[#allocation5 + $0xe8] sm:$0xff]  }
  0x51   :  { %951 = vmatpush3.bf16.msra.mxu1 %v1066_v7  ;;  %v1082_v23 = vld [vmem:[#allocation5 + $0xa8] sm:$0xff]   ;;  %v1083_v24 = vld [vmem:[#allocation5 + $0x70] sm:$0xff]   ;;  %v1087_v28 = vld [vmem:[#allocation5 + $0x78] sm:$0xff]  }
  0x52   :  { %952 = vmatprep.subr.bf16.mxu1 %v1069_v10  ;;  %v1084_v25 = vld [vmem:[#allocation5 + $0x30] sm:$0xff]   ;;  %v1088_v29 = vld [vmem:[#allocation5 + $0x38] sm:$0xff]   ;;  %v1091_v36 = vld [vmem:[#allocation5 + $0x140] sm:$0xff]  }
  0x53   :  { %931 = vmatpush3.bf16.msra.mxu0 %v1068_v9  ;;  %v1085_v26 = vld [vmem:[#allocation5 + $0xf0] sm:$0xff]   ;;  %v1089_v30 = vld [vmem:[#allocation5 + $0xf8] sm:$0xff]   ;;  %v84_v37 = vld [vmem:[#allocation2 + $0x18] sm:$0xff] }
  0x54   :  { %932 = vmatprep.subr.bf16.mxu0 %v1071_v12  ;;  %v1086_v27 = vld [vmem:[#allocation5 + $0xb0] sm:$0xff]   ;;  %v82_v31 = vld [vmem:[#allocation2 + $0x8] sm:$0xff]  ;;  %v90_v38 = vpack.c.bf16 %v84_v37, %v84_v37  ;;  %v1092_v39 = vld [vmem:[#allocation5 + $0x100] sm:$0xff]  }
  0x55   :  { %953 = vmatpush3.bf16.msra.mxu1 %v1070_v11  ;;  %v88_v32 = vpack.c.bf16 %v82_v31, %v82_v31  ;;  %v1090_v33 = vld [vmem:[#allocation5 + $0xb8] sm:$0xff]   ;;  %v81_v34 = vld [vmem:[#allocation2] sm:$0xff]  ;;  %v83_v40 = vld [vmem:[#allocation2 + $0x10] sm:$0xff] }
  0x56   :  { %954 = vmatprep.subr.bf16.mxu1 %v1073_v14  ;;  %v87_v35 = vpack.c.bf16 %v81_v34, %v81_v34  ;;  %556 = vmatprep.mubr.bf16.mxu1 %v90_v38  ;;  %v89_v41 = vpack.c.bf16 %v83_v40, %v83_v40  ;;  %v1093_v42 = vld [vmem:[#allocation5 + $0x148] sm:$0xff]   ;;  %v1095_v44 = vld [vmem:[#allocation5 + $0x150] sm:$0xff]   ;;  %v1097_v46 = vld [vmem:[#allocation5 + $0x158] sm:$0xff]  }
  0x57   :  { %933 = vmatpush3.bf16.msra.mxu0 %v1072_v13  ;;  %516 = vmatprep.mubr.bf16.mxu0 %v88_v32  ;;  %v1094_v43 = vld [vmem:[#allocation5 + $0x108] sm:$0xff]   ;;  %v1096_v45 = vld [vmem:[#allocation5 + $0x110] sm:$0xff]   ;;  %v1098_v47 = vld [vmem:[#allocation5 + $0x118] sm:$0xff]  }
  0x58   :  { %934 = vmatprep.subr.bf16.mxu0 %v1075_v16  ;;  %v1099_v48 = vld [vmem:[#allocation5 + $0x160] sm:$0xff]   ;;  %v1101_v50 = vld [vmem:[#allocation5 + $0x168] sm:$0xff]   ;;  %v86_v51 = vld [vmem:[#allocation2 + $0x28] sm:$0xff] }
  0x59   :  { %955 = vmatpush3.bf16.msra.mxu1 %v1074_v15  ;;  %v1100_v49 = vld [vmem:[#allocation5 + $0x120] sm:$0xff]   ;;  %v1102_v52 = vld [vmem:[#allocation5 + $0x128] sm:$0xff]   ;;  %v92_v53 = vpack.c.bf16 %v86_v51, %v86_v51  ;;  %v1103_v54 = vld [vmem:[#allocation5 + $0x170] sm:$0xff]  }
  0x5a   :  { %956 = vmatprep.subr.bf16.mxu1 %v1077_v18  ;;  %v1104_v55 = vld [vmem:[#allocation5 + $0x130] sm:$0xff]   ;;  %v1105_v56 = vld [vmem:[#allocation5 + $0x178] sm:$0xff]   ;;  %v1107_v60 = vld [vmem:[#allocation7] sm:$0xff]  }
  0x5b   :  { %935 = vmatpush3.bf16.msra.mxu0 %v1076_v17  ;;  %v1106_v57 = vld [vmem:[#allocation5 + $0x138] sm:$0xff]   ;;  %v85_v58 = vld [vmem:[#allocation2 + $0x20] sm:$0xff]  ;;  %v1108_v62 = vld [vmem:[#allocation7 + $0x8] sm:$0xff]  }
  0x5c   :  { %936 = vmatprep.subr.bf16.mxu0 %v1079_v20  ;;  %v91_v59 = vpack.c.bf16 %v85_v58, %v85_v58  ;;  %v1109_v63 = vld [vmem:[#allocation7 + $0x10] sm:$0xff]   ;;  %v1110_v0 = vld [vmem:[#allocation7 + $0x18] sm:$0xff]   ;;  %v1111_v1 = vld [vmem:[#allocation7 + $0x20] sm:$0xff]  }
  0x5d   :  { %957 = vmatpush3.bf16.msra.mxu1 %v1078_v19  ;;  %v1112_v2 = vld [vmem:[#allocation7 + $0x28] sm:$0xff]   ;;  %v1113_v3 = vld [vmem:[#allocation7 + $0x30] sm:$0xff]   ;;  %v1114_v4 = vld [vmem:[#allocation7 + $0x38] sm:$0xff]  }
  0x5e   :  { %958 = vmatprep.subr.bf16.mxu1 %v1081_v22  ;;  %v1115_v5 = vld [vmem:[#allocation8] sm:$0xff]   ;;  %v1116_v6 = vld [vmem:[#allocation8 + $0x8] sm:$0xff]   ;;  %v1117_v7 = vld [vmem:[#allocation8 + $0x10] sm:$0xff]  }
  0x5f   :  { %937 = vmatpush3.bf16.msra.mxu0 %v1080_v21  ;;  %v1118_v8 = vld [vmem:[#allocation8 + $0x18] sm:$0xff]   ;;  %v1119_v9 = vld [vmem:[#allocation8 + $0x20] sm:$0xff]   ;;  %v1120_v10 = vld [vmem:[#allocation8 + $0x28] sm:$0xff]  }
  0x60   :  { %938 = vmatprep.subr.bf16.mxu0 %v1083_v24  ;;  %v859_v12 = vld [vmem:[%s1392_s2] ss:$0 sm:$0xff] }
  0x61   :  { %959 = vmatpush3.bf16.msra.mxu1 %v1082_v23  ;;  %v1121_v32 = vld [vmem:[#allocation8 + $0x30] sm:$0xff]  }
  0x62   :  { %960 = vmatprep.subr.bf16.mxu1 %v1085_v26  ;;  %v908_v34 = vld [vmem:[%s1394_s4] ss:$0 sm:$0xff]  ;;  %s1253_s4 = smov [#allocation10]  }
  0x63   :  { %939 = vmatpush3.bf16.msra.mxu0 %v1084_v25  ;;  %s848_s28 = sshll.u32 %s1253_s4, 4  ;;  %s849_s28 = int_to_ptr.vmem [resolvable:$true] %s848_s28 }
  0x64   :  { %940 = vmatprep.subr.bf16.mxu0 %v1087_v28  ;;  %p1220_p5 = scmp.lt.s32.totalorder %s849_s28, %s849_s28 }
  0x65   :  { %961 = vmatpush3.bf16.msra.mxu1 %v1086_v27 }
  0x66   :  { %962 = vmatprep.subr.bf16.mxu1 %v1089_v30 }
  0x67   :  { %941 = vmatpush3.bf16.msra.mxu0 %v1088_v29 }
  0x68   :  { %970 = vmatprep.subr.bf16.mxu0 %v1091_v36 }
  0x69   :  { %963 = vmatpush3.bf16.msra.mxu1 %v1090_v33  ;;  %v1122_v33 = vld [vmem:[#allocation8 + $0x38] sm:$0xff]  }
  0x6a   :  { %517 = vmatmul.mubr.bf16.vlgmr.msra.gmra.mrb[0].mxu0 %v87_v35  ;;  %1010 = vmatprep.subr.bf16.mxu1 %v1251_v61 }
  0x6b   :  { %971 = vmatpush3.bf16.msra.mxu0 %v1092_v39  ;;  %596 = vmatprep.mubr.bf16.mxu0 %v92_v53 }
  0x6c   :  { %557 = vmatmul.mubr.bf16.vlgmr.msra.gmra.mrb[0].mxu1 %v89_v41  ;;  %972 = vmatprep.subr.bf16.mxu0 %v1093_v42  ;;  %v917_v42 = vld [vmem:[%s1396_s6] ss:$0 sm:$0xff]  ;;  %s1215_s6 = scalar_lea.vmem %s849_s28, 64 }
  0x6d   :  { %1011 = vmatpush3.bf16.msra.mxu1 %v1107_v60  ;;  %1026 = vmatprep.mubr.msk.bf16.mxu1 %vm1252_vm0, %v1251_v61  ;;  %p1216_p4 = scmp.ne.s32.totalorder %s849_s28, %s1215_s6  ;;  %p1221_p6 = scmp.lt.s32.totalorder %s1215_s6, %s1215_s6 }
  0x6e   :  { %1012 = vmatprep.subr.bf16.mxu1 %v1251_v61 }
  0x6f   :  { %973 = vmatpush3.bf16.msra.mxu0 %v1094_v43  ;;  %p1222_p7 = por %p1221_p6, %p1220_p5 }
  0x70   :  { %974 = vmatprep.subr.bf16.mxu0 %v1095_v44 }
  0x71   :  { %1013 = vmatpush3.bf16.msra.mxu1 %v1108_v62  ;;  %p1223_p8 = pnand %p1222_p7, %p1216_p4 }
  0x72   :  { %1014 = vmatprep.subr.bf16.mxu1 %v1251_v61 }
  0x73   :  { %975 = vmatpush3.bf16.msra.mxu0 %v1096_v45 }
  0x74   :  { %976 = vmatprep.subr.bf16.mxu0 %v1097_v46 }
  0x75   :  { %1015 = vmatpush3.bf16.msra.mxu1 %v1109_v63 }
  0x76   :  { %1016 = vmatprep.subr.bf16.mxu1 %v1251_v61 }
  0x77   :  { %977 = vmatpush3.bf16.msra.mxu0 %v1098_v47 }
  0x78   :  { %978 = vmatprep.subr.bf16.mxu0 %v1099_v48 }
  0x79   :  { %1017 = vmatpush3.bf16.msra.mxu1 %v1110_v0 }
  0x7a   :  { %1018 = vmatprep.subr.bf16.mxu1 %v1251_v61 }
  0x7b   :  { %979 = vmatpush3.bf16.msra.mxu0 %v1100_v49 }
  0x7c   :  { %980 = vmatprep.subr.bf16.mxu0 %v1101_v50 }
  0x7d   :  { %1019 = vmatpush3.bf16.msra.mxu1 %v1111_v1 }
  0x7e   :  { %1020 = vmatprep.subr.bf16.mxu1 %v1251_v61 }
  0x7f   :  { %981 = vmatpush3.bf16.msra.mxu0 %v1102_v52 }
  0x80   :  { %982 = vmatprep.subr.bf16.mxu0 %v1103_v54 }
  0x81   :  { %1021 = vmatpush3.bf16.msra.mxu1 %v1112_v2 }
  0x82   :  { %1022 = vmatprep.subr.bf16.mxu1 %v1251_v61 }
  0x83   :  { %983 = vmatpush3.bf16.msra.mxu0 %v1104_v55 }
  0x84   :  { %984 = vmatprep.subr.bf16.mxu0 %v1105_v56 }
  0x85   :  { %1023 = vmatpush3.bf16.msra.mxu1 %v1113_v3 }
  0x86   :  { %1024 = vmatprep.subr.bf16.mxu1 %v1251_v61 }
  0x87   :  { %985 = vmatpush3.bf16.msra.mxu0 %v1106_v57 }
  0x88   :  { %1030 = vmatprep.subr.bf16.mxu0 %v1251_v61 }
  0x89   :  { %1025 = vmatpush3.bf16.msra.mxu1 %v1114_v4 }
  0x8a   :  { %597 = vmatmul.mubr.bf16.vlgmr.msra.gmra.mrb[4].mxu0 %v91_v59 }
  0x8b   :  { %1046 = vmatprep.mubr.msk.bf16.mxu0 %vm1252_vm0, %v1251_v61  ;;  %1031 = vmatpush3.bf16.msra.mxu0 %v1115_v5 }
  0x8c   :  { %1032 = vmatprep.subr.bf16.mxu0 %v1251_v61 }
  0x8f   :  { %1033 = vmatpush3.bf16.msra.mxu0 %v1116_v6 }
  0x90   :  { %1034 = vmatprep.subr.bf16.mxu0 %v1251_v61 }
  0x93   :  { %1035 = vmatpush3.bf16.msra.mxu0 %v1117_v7 }
  0x94   :  { %1036 = vmatprep.subr.bf16.mxu0 %v1251_v61 }
  0x97   :  { %1037 = vmatpush3.bf16.msra.mxu0 %v1118_v8 }
  0x98   :  { %1038 = vmatprep.subr.bf16.mxu0 %v1251_v61 }
  0x9b   :  { %1039 = vmatpush3.bf16.msra.mxu0 %v1119_v9 }
  0x9c   :  { %1040 = vmatprep.subr.bf16.mxu0 %v1251_v61 }
  0x9f   :  { %1041 = vmatpush3.bf16.msra.mxu0 %v1120_v10 }
  0xa0   :  { %1042 = vmatprep.subr.bf16.mxu0 %v1251_v61 }
  0xa3   :  { %1043 = vmatpush3.bf16.msra.mxu0 %v1121_v32 }
  0xa4   :  { %1044 = vmatprep.subr.bf16.mxu0 %v1251_v61 }
  0xa7   :  { %1045 = vmatpush3.bf16.msra.mxu0 %v1122_v33 }
 0x13d   :  { %v942_v11 = vpop.f32.mrb[0].mxu0 }
 0x13e   :  { %v943_v13 = vpop.f32.mrb[1].mxu0 }
 0x13f   :  { %v944_v14 = vadd.f32 %v943_v13, %v942_v11  ;;  %v945_v15 = vpop.f32.mrb[2].mxu0  ;;  %v964_v16 = vpop.f32.mrb[0].mxu1 }
 0x140   :  { %v946_v17 = vpop.f32.mrb[3].mxu0  ;;  %v965_v19 = vpop.f32.mrb[1].mxu1 }
 0x141   :  { %v519_v18 = vadd.f32 %v944_v14, %v859_v12  ;;  %v966_v20 = vadd.f32 %v965_v19, %v964_v16  ;;  %v967_v21 = vpop.f32.mrb[2].mxu1 }
 0x142   :  { %v968_v22 = vpop.f32.mrb[3].mxu1 }
 0x143   :  { %v559_v23 = vadd.f32 %v966_v20, %v519_v18 }
 0x15d   :  { %v986_v24 = vpop.f32.mrb[4].mxu0 }
 0x15e   :  { %v987_v25 = vpop.f32.mrb[5].mxu0 }
 0x15f   :  { %v988_v26 = vadd.f32 %v987_v25, %v986_v24  ;;  %v989_v27 = vpop.f32.mrb[6].mxu0 }
 0x160   :  { %v990_v28 = vpop.f32.mrb[7].mxu0 }
 0x161   :  { %v599_v29 = vadd.f32 %v988_v26, %v559_v23 }
 0x163   :  { %v604_v30 = vmax.f32 %v599_v29, 0.0 }
 0x165   :  { %v605_v31 = vpack.c.bf16 %v604_v30, %v604_v30 }
 0x167   :  { %1027 = vmatmul.mubr.bf16.vlgmr.msra.gmra.mrb[4].mxu1 %v605_v31 }
 0x23a   :  { %v711_v35 = vpop.f32.mrb[4].mxu1 }
 0x23b   :  { %v712_v36 = vadd.f32 %v908_v34, %v711_v35  ;;  %v1028_v37 = vpop.f32.mrb[5].mxu1 }
 0x23c   :  { %v714_v38 = vpop.f32.mrb[6].mxu1 }
 0x23d   :  { %v717_v39 = vmax.f32 %v712_v36, 0.0  ;;  %v1029_v40 = vpop.f32.mrb[7].mxu1 }
 0x23f   :  { %v718_v41 = vpack.c.bf16 %v717_v39, %v717_v39 }
 0x241   :  { %1047 = vmatmul.mubr.bf16.vlgmr.msra.gmra.mrb[8].mxu0 %v718_v41 }
 0x314   :  { %v824_v43 = vpop.f32.mrb[8].mxu0 }
 0x315   :  { %v825_v44 = vadd.f32 %v917_v42, %v824_v43  ;;  %v1048_v45 = vpop.f32.mrb[9].mxu0 }
 0x316   :  { %v827_v46 = vpop.f32.mrb[10].mxu0 }
 0x317   :  { %830 = vmax.xlane.f32.xlu0 %v825_v44  ;;  %v1049_v47 = vpop.f32.mrb[11].mxu0 }
 0x3a4   :  { %v831_v48 = vpop.xlane.xlu0 %830 }
 0x3a5   :  { %v832_v49 = vsub.f32 %v825_v44, %v831_v48 }
 0x3a7   :  { %v833_v50 = vmul.f32 1.442695, %v832_v49 }
 0x3a9   :  { %1123 = vpow2.f32 %v833_v50 }
 0x3b3   :  { %v1124_v51 = vpop.eup %1123 }
 0x3b4   :  { %835 = vadd.xlane.f32.xlu0 %v1124_v51 }
 0x441   :  { %v836_v52 = vpop.xlane.xlu0 %835 }
 0x442   :  { %1125 = vlog2.f32 %v836_v52 }
 0x44c   :  { %v1126_v53 = vpop.eup %1125 }
 0x44d   :  { %v838_v54 = vmul.f32 0.6931472, %v1126_v53 }
 0x44f   :  { %v839_v55 = vsub.f32 %v832_v49, %v838_v54 }
 0x451   :  { %v840_v56 = vpack.c.bf16 %v839_v55, %v839_v55 }
 0x453   :  { %841 = vst [vmem:[#allocation10] sm:$0xf] %v840_v56 }
 0x454   :  { %1226 = shalt.err (!%p1223_p8)
}
 0x455   :  { %s1227_s8 = scalar_lea.hbm %s1397_s7, 64 }
 0x456   :  { %p1228_p9 = scmp.ne.s32.totalorder %s1397_s7, %s1227_s8  ;;  %p1231_p10 = scmp.lt.u32.totalorder %s1227_s8, %s1397_s7 }
 0x458   :  { %p1233_p11 = pnand %p1231_p10, %p1228_p9 }
 0x45a   :  { %1236 = shalt.err (!%p1233_p11)
}
 0x45b   :  { %851 = dma.vmem_to_hbm [thread:$0]  %s849_s28, 64, %s1397_s7, [#allocation4]  }
 0x45c   :  { %1243 = dma.done.wait [#allocation4], 64  }
 0x45d   :  { %1244 = vsyncadd [#allocation4], 4294967232 }
 0x45e   :  { %855 = vsyncpa [#allocation3], 1 }
 0x45f   :  { %856 = vsyncpa [#allocation6], 1 }
 0x460   :  { %857 = vsyncpa [#allocation9], 1 }
 0x461   :  { %858 = vsyncpa [#allocation4], 1 }

</bundles_post_ra>
